<compile_context>
chip_gen: v5e
topology: v5e:2x2
jax: 0.10.0
libtpu: 0.0.40
codegen_flags: <defaults>
</compile_context>

<pallas_src>
import jax
import jax.numpy as jnp
from jax.experimental import pallas as pl
from jax.experimental.pallas import tpu as pltpu

C1 = 4      # conv1 out channels
C2 = 8      # conv2 out channels
HID = 64    # fc1 width
OUT = 2     # fc2 width


def tinychirp_kernel(xe_ref, xo_ref, w1_ref, b1_ref, wc_ref, bc_ref,
                     wf2_ref, bf2_ref, out_ref):
    xe = xe_ref[...]                       # (bB, Lh) even time samples
    xo = xo_ref[...]                       # (bB, Lh) odd  time samples
    bB, Lh = xe.shape
    P = Lh - 1                             # MaxPool1d(2,2) output length
    hid = wc_ref.shape[1]

    # ---- hoisted shifted taps (computed once, reused by all C1 channels) ----
    xe0 = xe[:, 0:P]
    xo0 = xo[:, 0:P]
    xe1 = xe[:, 1:P + 1]
    xo1 = xo[:, 1:P + 1]

    wc = wc_ref[...]                                   # (C1*3, hid) folded conv2∘avgpool∘fc1
    h = jnp.broadcast_to(bc_ref[...], (bB, hid))       # folded bias (b2 @ wf1.T + bf1)

    for c in range(C1):
        k0 = w1_ref[c, 0]
        k1 = w1_ref[c, 1]
        k2 = w1_ref[c, 2]
        b = b1_ref[c]

        # conv1 (1 -> C1, k=3) split into even/odd outputs + ReLU + MaxPool(2,2):
        # y[2j]   = xe[j]*k0 + xo[j]*k1 + xe[j+1]*k2
        # y[2j+1] = xo[j]*k0 + xe[j+1]*k1 + xo[j+1]*k2
        y_even = xe0 * k0 + xo0 * k1 + xe1 * k2 + b
        y_odd = xo0 * k0 + xe1 * k1 + xo1 * k2 + b
        p = jnp.maximum(jnp.maximum(y_even, y_odd), 0.0)        # (bB, P)

        # avgpool∘conv2 swap: window sums of length T2 = P-2 starting at k=0,1,2,
        # computed as (total lane-sum) minus two boundary lanes (XLU reduce + tiny VPU).
        total = jnp.sum(p, axis=1, keepdims=True)               # (bB, 1)
        p0 = p[:, 0:1]
        p1 = p[:, 1:2]
        pm2 = p[:, P - 2:P - 1]
        pm1 = p[:, P - 1:P]
        s0 = total - pm2 - pm1          # sum_t p[t + 0]
        s1 = total - p0 - pm1           # sum_t p[t + 1]
        s2 = total - p0 - p1            # sum_t p[t + 2]

        # 3 broadcast-FMAs per channel onto the fc1 pre-activation (no MXU, no concat).
        j = 3 * c
        h = (h + s0 * wc[j + 0:j + 1, :]
               + s1 * wc[j + 1:j + 2, :]
               + s2 * wc[j + 2:j + 3, :])

    # ---- fc1 ReLU + fc2 ----
    h = jnp.maximum(h, 0.0)
    out = jnp.dot(h, wf2_ref[...], preferred_element_type=jnp.float32) + bf2_ref[...]
    out_ref[...] = out                                          # (bB, OUT)


def tinychirp_forward(x, params, *, block_b=None):
    """x: (B, 1, L) float32 (PyTorch NCW), L even. Returns squeezed logits."""
    w1, b1, w2, b2, wf1, bf1, wf2, bf2 = params
    B, cin, L = x.shape
    assert cin == 1 and L % 2 == 0 and L >= 10
    Lh = L // 2
    P = Lh - 1
    T2 = P - 2

    # Trace-time fold: AdaptiveAvgPool (1/T2) into conv2, then conv2(+b2) into fc1.
    hi = jax.lax.Precision.HIGHEST
    w2m = w2.reshape(C2, C1 * 3) / T2                            # (C2, 12)
    wc = jnp.dot(w2m.T, wf1.T, precision=hi)                     # (12, HID)
    bc = (jnp.dot(b2, wf1.T, precision=hi) + bf1).reshape(1, HID)

    # Even/odd de-interleave so MaxPool(2,2) becomes unit-stride in the kernel.
    xs = x[:, 0, :].reshape(B, Lh, 2)
    xe = xs[..., 0]                       # (B, Lh)
    xo = xs[..., 1]                       # (B, Lh)

    # Batch tiling: small batches go as one block; larger batches use 16-row tiles
    # (multiple of 8 for the sublane rule, bounded VMEM even at L = 48000).
    if block_b is None:
        block_b = B if B <= 16 else 16
    nb = pl.cdiv(B, block_b)
    Bp = nb * block_b
    if Bp != B:
        pad = ((0, Bp - B), (0, 0))
        xe = jnp.pad(xe, pad)
        xo = jnp.pad(xo, pad)

    batched = pl.BlockSpec((block_b, Lh), lambda i: (i, 0))
    vmem = pl.BlockSpec(memory_space=pltpu.MemorySpace.VMEM)
    smem = pl.BlockSpec(memory_space=pltpu.MemorySpace.SMEM)

    out = pl.pallas_call(
        tinychirp_kernel,
        out_shape=jax.ShapeDtypeStruct((Bp, OUT), jnp.float32),
        grid=(nb,),
        in_specs=[
            batched,      # xe (pipelined per batch tile)
            batched,      # xo
            smem,         # conv1 weight (C1, 3) scalars
            smem,         # conv1 bias (C1,)
            vmem,         # folded conv2∘avgpool∘fc1 weight (12, HID)
            vmem,         # folded bias (1, HID)
            vmem,         # fc2 weight, transposed (HID, OUT)
            vmem,         # fc2 bias (1, OUT)
        ],
        out_specs=pl.BlockSpec((block_b, OUT), lambda i: (i, 0)),
        compiler_params=pltpu.CompilerParams(
            dimension_semantics=("parallel",),
            vmem_limit_bytes=32 * 1024 * 1024,
            # let XLA fuse the even/odd split into the kernel's input DMAs
            allow_input_fusion=[True, True, False, False, False, False, False, False],
        ),
    )(xe, xo,
      w1.reshape(C1, 3), b1,
      wc, bc,
      wf2.T, bf2.reshape(1, OUT))

    if Bp != B:
        out = out[:B]
    return jnp.squeeze(out)               # mirrors PyTorch's x.squeeze()


def init_params(key):
    ks = jax.random.split(key, 8)
    w1 = jax.random.normal(ks[0], (C1, 1, 3), jnp.float32) * 0.5
    b1 = jax.random.normal(ks[1], (C1,), jnp.float32) * 0.1
    w2 = jax.random.normal(ks[2], (C2, C1, 3), jnp.float32) * 0.3
    b2 = jax.random.normal(ks[3], (C2,), jnp.float32) * 0.1
    wf1 = jax.random.normal(ks[4], (HID, C2), jnp.float32) * 0.2
    bf1 = jax.random.normal(ks[5], (HID,), jnp.float32) * 0.1
    wf2 = jax.random.normal(ks[6], (OUT, HID), jnp.float32) * 0.2
    bf2 = jax.random.normal(ks[7], (OUT,), jnp.float32) * 0.1
    return (w1, b1, w2, b2, wf1, bf1, wf2, bf2)


def ref_forward(x, params):
    """Pure-JAX reference matching the PyTorch forward."""
    w1, b1, w2, b2, wf1, bf1, wf2, bf2 = params
    B, _, L = x.shape
    T1 = L - 2
    taps1 = jnp.stack([x[:, 0, k:k + T1] for k in range(3)], axis=-1)       # (B, T1, 3)
    c1 = jnp.einsum('btk,ck->bct', taps1, w1[:, 0, :]) + b1[None, :, None]
    c1 = jnp.maximum(c1, 0.0)
    P = T1 // 2
    pooled = jnp.max(c1[:, :, :2 * P].reshape(B, C1, P, 2), axis=-1)
    T2 = P - 2
    taps2 = jnp.stack([pooled[:, :, k:k + T2] for k in range(3)], axis=-1)  # (B,C1,T2,3)
    c2 = jnp.einsum('bitk,oik->bot', taps2, w2) + b2[None, :, None]
    feat = jnp.mean(c2, axis=-1)                                            # (B, C2)
    h = jnp.maximum(feat @ wf1.T + bf1, 0.0)
    return h @ wf2.T + bf2


if __name__ == "__main__":
    key = jax.random.PRNGKey(0)
    kx, kx2, kp = jax.random.split(key, 3)
    params = init_params(kp)

    # Test 1: small batch, single grid block.
    B, L = 2, 64
    x = jax.random.normal(kx, (B, 1, L), jnp.float32)
    out = jax.block_until_ready(tinychirp_forward(x, params))
    ref = jnp.squeeze(ref_forward(x, params))
    assert out.shape == ref.shape == (B, OUT)
    assert jnp.allclose(out, ref, rtol=1e-4, atol=1e-4), (out, ref)

    # Test 2: batch padded + multi-step "parallel" grid (block_b=8).
    B2, L2 = 10, 96
    x2 = jax.random.normal(kx2, (B2, 1, L2), jnp.float32)
    out2 = jax.block_until_ready(tinychirp_forward(x2, params, block_b=8))
    ref2 = jnp.squeeze(ref_forward(x2, params))
    assert out2.shape == ref2.shape == (B2, OUT)
    assert jnp.allclose(out2, ref2, rtol=1e-4, atol=1e-4), (out2, ref2)

    print("KERNEL_OK")
</pallas_src>

<mosaic_0001>
module attributes {stable_mosaic.version = 11 : i64} {
  func.func @tinychirp_kernel(%arg0: i32, %arg1: memref<2x32xf32, #tpu.memory_space<vmem>>, %arg2: memref<2x32xf32, #tpu.memory_space<vmem>>, %arg3: memref<4x3xf32, #tpu.memory_space<smem>>, %arg4: memref<4xf32, #tpu.memory_space<smem>>, %arg5: memref<12x64xf32, #tpu.memory_space<vmem>>, %arg6: memref<1x64xf32, #tpu.memory_space<vmem>>, %arg7: memref<64x2xf32, #tpu.memory_space<vmem>>, %arg8: memref<1x2xf32, #tpu.memory_space<vmem>>, %arg9: memref<2x2xf32, #tpu.memory_space<vmem>>) attributes {dimension_semantics = [#tpu.dimension_semantics<parallel>], iteration_bounds = array<i64: 1>, scalar_prefetch = 0 : i64, scratch_operands = 0 : i64, tpu.core_type = #tpu.core_type<tc>, window_params = [{transform_indices = @transform_0, window_bounds = array<i64: 2, 32>}, {transform_indices = @transform_1, window_bounds = array<i64: 2, 32>}, {transform_indices = @transform_2, window_bounds = array<i64: 4, 3>}, {transform_indices = @transform_3, window_bounds = array<i64: 4>}, {pipeline_mode = #tpu.pipeline_mode<synchronous>, transform_indices = @transform_4, window_bounds = array<i64: 12, 64>}, {pipeline_mode = #tpu.pipeline_mode<synchronous>, transform_indices = @transform_5, window_bounds = array<i64: 1, 64>}, {pipeline_mode = #tpu.pipeline_mode<synchronous>, transform_indices = @transform_6, window_bounds = array<i64: 64, 2>}, {pipeline_mode = #tpu.pipeline_mode<synchronous>, transform_indices = @transform_7, window_bounds = array<i64: 1, 2>}, {transform_indices = @transform_8, window_bounds = array<i64: 2, 2>}]} {
    %c0 = arith.constant 0 : index
    %c0_0 = arith.constant 0 : index
    %0 = vector.load %arg1[%c0, %c0_0] : memref<2x32xf32, #tpu.memory_space<vmem>>, vector<2x32xf32>
    %c0_1 = arith.constant 0 : index
    %c0_2 = arith.constant 0 : index
    %1 = vector.load %arg2[%c0_1, %c0_2] : memref<2x32xf32, #tpu.memory_space<vmem>>, vector<2x32xf32>
    %2 = vector.extract_strided_slice %0 {offsets = [0, 0], sizes = [2, 31], strides = [1, 1]} : vector<2x32xf32> to vector<2x31xf32>
    %3 = vector.extract_strided_slice %1 {offsets = [0, 0], sizes = [2, 31], strides = [1, 1]} : vector<2x32xf32> to vector<2x31xf32>
    %4 = vector.extract_strided_slice %0 {offsets = [0, 1], sizes = [2, 31], strides = [1, 1]} : vector<2x32xf32> to vector<2x31xf32>
    %5 = vector.extract_strided_slice %1 {offsets = [0, 1], sizes = [2, 31], strides = [1, 1]} : vector<2x32xf32> to vector<2x31xf32>
    %c0_3 = arith.constant 0 : index
    %c0_4 = arith.constant 0 : index
    %6 = vector.load %arg5[%c0_3, %c0_4] : memref<12x64xf32, #tpu.memory_space<vmem>>, vector<12x64xf32>
    %c0_5 = arith.constant 0 : index
    %c0_6 = arith.constant 0 : index
    %7 = vector.load %arg6[%c0_5, %c0_6] : memref<1x64xf32, #tpu.memory_space<vmem>>, vector<1x64xf32>
    %8 = vector.shape_cast %7 : vector<1x64xf32> to vector<1x64xf32>
    %9 = vector.broadcast %8 : vector<1x64xf32> to vector<2x64xf32>
    %c0_7 = arith.constant 0 : index
    %c0_8 = arith.constant 0 : index
    %10 = memref.load %arg3[%c0_7, %c0_8] : memref<4x3xf32, #tpu.memory_space<smem>>
    %c0_9 = arith.constant 0 : index
    %c1 = arith.constant 1 : index
    %11 = memref.load %arg3[%c0_9, %c1] : memref<4x3xf32, #tpu.memory_space<smem>>
    %c0_10 = arith.constant 0 : index
    %c2 = arith.constant 2 : index
    %12 = memref.load %arg3[%c0_10, %c2] : memref<4x3xf32, #tpu.memory_space<smem>>
    %c0_11 = arith.constant 0 : index
    %13 = memref.load %arg4[%c0_11] : memref<4xf32, #tpu.memory_space<smem>>
    %14 = vector.broadcast %10 : f32 to vector<2x31xf32>
    %15 = arith.mulf %2, %14 : vector<2x31xf32>
    %16 = vector.broadcast %11 : f32 to vector<2x31xf32>
    %17 = arith.mulf %3, %16 : vector<2x31xf32>
    %18 = arith.addf %15, %17 : vector<2x31xf32>
    %19 = vector.broadcast %12 : f32 to vector<2x31xf32>
    %20 = arith.mulf %4, %19 : vector<2x31xf32>
    %21 = arith.addf %18, %20 : vector<2x31xf32>
    %22 = vector.broadcast %13 : f32 to vector<2x31xf32>
    %23 = arith.addf %21, %22 : vector<2x31xf32>
    %24 = vector.broadcast %10 : f32 to vector<2x31xf32>
    %25 = arith.mulf %3, %24 : vector<2x31xf32>
    %26 = vector.broadcast %11 : f32 to vector<2x31xf32>
    %27 = arith.mulf %4, %26 : vector<2x31xf32>
    %28 = arith.addf %25, %27 : vector<2x31xf32>
    %29 = vector.broadcast %12 : f32 to vector<2x31xf32>
    %30 = arith.mulf %5, %29 : vector<2x31xf32>
    %31 = arith.addf %28, %30 : vector<2x31xf32>
    %32 = vector.broadcast %13 : f32 to vector<2x31xf32>
    %33 = arith.addf %31, %32 : vector<2x31xf32>
    %34 = arith.maximumf %23, %33 : vector<2x31xf32>
    %cst = arith.constant 0.000000e+00 : f32
    %35 = vector.broadcast %cst : f32 to vector<2x31xf32>
    %36 = arith.maximumf %34, %35 : vector<2x31xf32>
    %cst_12 = arith.constant dense<0.000000e+00> : vector<2xf32>
    %37 = vector.multi_reduction <add>, %36, %cst_12 [1] : vector<2x31xf32> to vector<2xf32>
    %38 = vector.shape_cast %37 : vector<2xf32> to vector<2x1xf32>
    %39 = vector.extract_strided_slice %36 {offsets = [0, 0], sizes = [2, 1], strides = [1, 1]} : vector<2x31xf32> to vector<2x1xf32>
    %40 = vector.extract_strided_slice %36 {offsets = [0, 1], sizes = [2, 1], strides = [1, 1]} : vector<2x31xf32> to vector<2x1xf32>
    %41 = vector.extract_strided_slice %36 {offsets = [0, 29], sizes = [2, 1], strides = [1, 1]} : vector<2x31xf32> to vector<2x1xf32>
    %42 = vector.extract_strided_slice %36 {offsets = [0, 30], sizes = [2, 1], strides = [1, 1]} : vector<2x31xf32> to vector<2x1xf32>
    %43 = arith.subf %38, %41 : vector<2x1xf32>
    %44 = arith.subf %43, %42 : vector<2x1xf32>
    %45 = arith.subf %38, %39 : vector<2x1xf32>
    %46 = arith.subf %45, %42 : vector<2x1xf32>
    %47 = arith.subf %38, %39 : vector<2x1xf32>
    %48 = arith.subf %47, %40 : vector<2x1xf32>
    %49 = vector.extract_strided_slice %6 {offsets = [0, 0], sizes = [1, 64], strides = [1, 1]} : vector<12x64xf32> to vector<1x64xf32>
    %50 = vector.broadcast %44 : vector<2x1xf32> to vector<2x64xf32>
    %51 = vector.broadcast %49 : vector<1x64xf32> to vector<2x64xf32>
    %52 = arith.mulf %50, %51 : vector<2x64xf32>
    %53 = arith.addf %9, %52 : vector<2x64xf32>
    %54 = vector.extract_strided_slice %6 {offsets = [1, 0], sizes = [1, 64], strides = [1, 1]} : vector<12x64xf32> to vector<1x64xf32>
    %55 = vector.broadcast %46 : vector<2x1xf32> to vector<2x64xf32>
    %56 = vector.broadcast %54 : vector<1x64xf32> to vector<2x64xf32>
    %57 = arith.mulf %55, %56 : vector<2x64xf32>
    %58 = arith.addf %53, %57 : vector<2x64xf32>
    %59 = vector.extract_strided_slice %6 {offsets = [2, 0], sizes = [1, 64], strides = [1, 1]} : vector<12x64xf32> to vector<1x64xf32>
    %60 = vector.broadcast %48 : vector<2x1xf32> to vector<2x64xf32>
    %61 = vector.broadcast %59 : vector<1x64xf32> to vector<2x64xf32>
    %62 = arith.mulf %60, %61 : vector<2x64xf32>
    %63 = arith.addf %58, %62 : vector<2x64xf32>
    %c1_13 = arith.constant 1 : index
    %c0_14 = arith.constant 0 : index
    %64 = memref.load %arg3[%c1_13, %c0_14] : memref<4x3xf32, #tpu.memory_space<smem>>
    %c1_15 = arith.constant 1 : index
    %c1_16 = arith.constant 1 : index
    %65 = memref.load %arg3[%c1_15, %c1_16] : memref<4x3xf32, #tpu.memory_space<smem>>
    %c1_17 = arith.constant 1 : index
    %c2_18 = arith.constant 2 : index
    %66 = memref.load %arg3[%c1_17, %c2_18] : memref<4x3xf32, #tpu.memory_space<smem>>
    %c1_19 = arith.constant 1 : index
    %67 = memref.load %arg4[%c1_19] : memref<4xf32, #tpu.memory_space<smem>>
    %68 = vector.broadcast %64 : f32 to vector<2x31xf32>
    %69 = arith.mulf %2, %68 : vector<2x31xf32>
    %70 = vector.broadcast %65 : f32 to vector<2x31xf32>
    %71 = arith.mulf %3, %70 : vector<2x31xf32>
    %72 = arith.addf %69, %71 : vector<2x31xf32>
    %73 = vector.broadcast %66 : f32 to vector<2x31xf32>
    %74 = arith.mulf %4, %73 : vector<2x31xf32>
    %75 = arith.addf %72, %74 : vector<2x31xf32>
    %76 = vector.broadcast %67 : f32 to vector<2x31xf32>
    %77 = arith.addf %75, %76 : vector<2x31xf32>
    %78 = vector.broadcast %64 : f32 to vector<2x31xf32>
    %79 = arith.mulf %3, %78 : vector<2x31xf32>
    %80 = vector.broadcast %65 : f32 to vector<2x31xf32>
    %81 = arith.mulf %4, %80 : vector<2x31xf32>
    %82 = arith.addf %79, %81 : vector<2x31xf32>
    %83 = vector.broadcast %66 : f32 to vector<2x31xf32>
    %84 = arith.mulf %5, %83 : vector<2x31xf32>
    %85 = arith.addf %82, %84 : vector<2x31xf32>
    %86 = vector.broadcast %67 : f32 to vector<2x31xf32>
    %87 = arith.addf %85, %86 : vector<2x31xf32>
    %88 = arith.maximumf %77, %87 : vector<2x31xf32>
    %cst_20 = arith.constant 0.000000e+00 : f32
    %89 = vector.broadcast %cst_20 : f32 to vector<2x31xf32>
    %90 = arith.maximumf %88, %89 : vector<2x31xf32>
    %cst_21 = arith.constant dense<0.000000e+00> : vector<2xf32>
    %91 = vector.multi_reduction <add>, %90, %cst_21 [1] : vector<2x31xf32> to vector<2xf32>
    %92 = vector.shape_cast %91 : vector<2xf32> to vector<2x1xf32>
    %93 = vector.extract_strided_slice %90 {offsets = [0, 0], sizes = [2, 1], strides = [1, 1]} : vector<2x31xf32> to vector<2x1xf32>
    %94 = vector.extract_strided_slice %90 {offsets = [0, 1], sizes = [2, 1], strides = [1, 1]} : vector<2x31xf32> to vector<2x1xf32>
    %95 = vector.extract_strided_slice %90 {offsets = [0, 29], sizes = [2, 1], strides = [1, 1]} : vector<2x31xf32> to vector<2x1xf32>
    %96 = vector.extract_strided_slice %90 {offsets = [0, 30], sizes = [2, 1], strides = [1, 1]} : vector<2x31xf32> to vector<2x1xf32>
    %97 = arith.subf %92, %95 : vector<2x1xf32>
    %98 = arith.subf %97, %96 : vector<2x1xf32>
    %99 = arith.subf %92, %93 : vector<2x1xf32>
    %100 = arith.subf %99, %96 : vector<2x1xf32>
    %101 = arith.subf %92, %93 : vector<2x1xf32>
    %102 = arith.subf %101, %94 : vector<2x1xf32>
    %103 = vector.extract_strided_slice %6 {offsets = [3, 0], sizes = [1, 64], strides = [1, 1]} : vector<12x64xf32> to vector<1x64xf32>
    %104 = vector.broadcast %98 : vector<2x1xf32> to vector<2x64xf32>
    %105 = vector.broadcast %103 : vector<1x64xf32> to vector<2x64xf32>
    %106 = arith.mulf %104, %105 : vector<2x64xf32>
    %107 = arith.addf %63, %106 : vector<2x64xf32>
    %108 = vector.extract_strided_slice %6 {offsets = [4, 0], sizes = [1, 64], strides = [1, 1]} : vector<12x64xf32> to vector<1x64xf32>
    %109 = vector.broadcast %100 : vector<2x1xf32> to vector<2x64xf32>
    %110 = vector.broadcast %108 : vector<1x64xf32> to vector<2x64xf32>
    %111 = arith.mulf %109, %110 : vector<2x64xf32>
    %112 = arith.addf %107, %111 : vector<2x64xf32>
    %113 = vector.extract_strided_slice %6 {offsets = [5, 0], sizes = [1, 64], strides = [1, 1]} : vector<12x64xf32> to vector<1x64xf32>
    %114 = vector.broadcast %102 : vector<2x1xf32> to vector<2x64xf32>
    %115 = vector.broadcast %113 : vector<1x64xf32> to vector<2x64xf32>
    %116 = arith.mulf %114, %115 : vector<2x64xf32>
    %117 = arith.addf %112, %116 : vector<2x64xf32>
    %c2_22 = arith.constant 2 : index
    %c0_23 = arith.constant 0 : index
    %118 = memref.load %arg3[%c2_22, %c0_23] : memref<4x3xf32, #tpu.memory_space<smem>>
    %c2_24 = arith.constant 2 : index
    %c1_25 = arith.constant 1 : index
    %119 = memref.load %arg3[%c2_24, %c1_25] : memref<4x3xf32, #tpu.memory_space<smem>>
    %c2_26 = arith.constant 2 : index
    %c2_27 = arith.constant 2 : index
    %120 = memref.load %arg3[%c2_26, %c2_27] : memref<4x3xf32, #tpu.memory_space<smem>>
    %c2_28 = arith.constant 2 : index
    %121 = memref.load %arg4[%c2_28] : memref<4xf32, #tpu.memory_space<smem>>
    %122 = vector.broadcast %118 : f32 to vector<2x31xf32>
    %123 = arith.mulf %2, %122 : vector<2x31xf32>
    %124 = vector.broadcast %119 : f32 to vector<2x31xf32>
    %125 = arith.mulf %3, %124 : vector<2x31xf32>
    %126 = arith.addf %123, %125 : vector<2x31xf32>
    %127 = vector.broadcast %120 : f32 to vector<2x31xf32>
    %128 = arith.mulf %4, %127 : vector<2x31xf32>
    %129 = arith.addf %126, %128 : vector<2x31xf32>
    %130 = vector.broadcast %121 : f32 to vector<2x31xf32>
    %131 = arith.addf %129, %130 : vector<2x31xf32>
    %132 = vector.broadcast %118 : f32 to vector<2x31xf32>
    %133 = arith.mulf %3, %132 : vector<2x31xf32>
    %134 = vector.broadcast %119 : f32 to vector<2x31xf32>
    %135 = arith.mulf %4, %134 : vector<2x31xf32>
    %136 = arith.addf %133, %135 : vector<2x31xf32>
    %137 = vector.broadcast %120 : f32 to vector<2x31xf32>
    %138 = arith.mulf %5, %137 : vector<2x31xf32>
    %139 = arith.addf %136, %138 : vector<2x31xf32>
    %140 = vector.broadcast %121 : f32 to vector<2x31xf32>
    %141 = arith.addf %139, %140 : vector<2x31xf32>
    %142 = arith.maximumf %131, %141 : vector<2x31xf32>
    %cst_29 = arith.constant 0.000000e+00 : f32
    %143 = vector.broadcast %cst_29 : f32 to vector<2x31xf32>
    %144 = arith.maximumf %142, %143 : vector<2x31xf32>
    %cst_30 = arith.constant dense<0.000000e+00> : vector<2xf32>
    %145 = vector.multi_reduction <add>, %144, %cst_30 [1] : vector<2x31xf32> to vector<2xf32>
    %146 = vector.shape_cast %145 : vector<2xf32> to vector<2x1xf32>
    %147 = vector.extract_strided_slice %144 {offsets = [0, 0], sizes = [2, 1], strides = [1, 1]} : vector<2x31xf32> to vector<2x1xf32>
    %148 = vector.extract_strided_slice %144 {offsets = [0, 1], sizes = [2, 1], strides = [1, 1]} : vector<2x31xf32> to vector<2x1xf32>
    %149 = vector.extract_strided_slice %144 {offsets = [0, 29], sizes = [2, 1], strides = [1, 1]} : vector<2x31xf32> to vector<2x1xf32>
    %150 = vector.extract_strided_slice %144 {offsets = [0, 30], sizes = [2, 1], strides = [1, 1]} : vector<2x31xf32> to vector<2x1xf32>
    %151 = arith.subf %146, %149 : vector<2x1xf32>
    %152 = arith.subf %151, %150 : vector<2x1xf32>
    %153 = arith.subf %146, %147 : vector<2x1xf32>
    %154 = arith.subf %153, %150 : vector<2x1xf32>
    %155 = arith.subf %146, %147 : vector<2x1xf32>
    %156 = arith.subf %155, %148 : vector<2x1xf32>
    %157 = vector.extract_strided_slice %6 {offsets = [6, 0], sizes = [1, 64], strides = [1, 1]} : vector<12x64xf32> to vector<1x64xf32>
    %158 = vector.broadcast %152 : vector<2x1xf32> to vector<2x64xf32>
    %159 = vector.broadcast %157 : vector<1x64xf32> to vector<2x64xf32>
    %160 = arith.mulf %158, %159 : vector<2x64xf32>
    %161 = arith.addf %117, %160 : vector<2x64xf32>
    %162 = vector.extract_strided_slice %6 {offsets = [7, 0], sizes = [1, 64], strides = [1, 1]} : vector<12x64xf32> to vector<1x64xf32>
    %163 = vector.broadcast %154 : vector<2x1xf32> to vector<2x64xf32>
    %164 = vector.broadcast %162 : vector<1x64xf32> to vector<2x64xf32>
    %165 = arith.mulf %163, %164 : vector<2x64xf32>
    %166 = arith.addf %161, %165 : vector<2x64xf32>
    %167 = vector.extract_strided_slice %6 {offsets = [8, 0], sizes = [1, 64], strides = [1, 1]} : vector<12x64xf32> to vector<1x64xf32>
    %168 = vector.broadcast %156 : vector<2x1xf32> to vector<2x64xf32>
    %169 = vector.broadcast %167 : vector<1x64xf32> to vector<2x64xf32>
    %170 = arith.mulf %168, %169 : vector<2x64xf32>
    %171 = arith.addf %166, %170 : vector<2x64xf32>
    %c3 = arith.constant 3 : index
    %c0_31 = arith.constant 0 : index
    %172 = memref.load %arg3[%c3, %c0_31] : memref<4x3xf32, #tpu.memory_space<smem>>
    %c3_32 = arith.constant 3 : index
    %c1_33 = arith.constant 1 : index
    %173 = memref.load %arg3[%c3_32, %c1_33] : memref<4x3xf32, #tpu.memory_space<smem>>
    %c3_34 = arith.constant 3 : index
    %c2_35 = arith.constant 2 : index
    %174 = memref.load %arg3[%c3_34, %c2_35] : memref<4x3xf32, #tpu.memory_space<smem>>
    %c3_36 = arith.constant 3 : index
    %175 = memref.load %arg4[%c3_36] : memref<4xf32, #tpu.memory_space<smem>>
    %176 = vector.broadcast %172 : f32 to vector<2x31xf32>
    %177 = arith.mulf %2, %176 : vector<2x31xf32>
    %178 = vector.broadcast %173 : f32 to vector<2x31xf32>
    %179 = arith.mulf %3, %178 : vector<2x31xf32>
    %180 = arith.addf %177, %179 : vector<2x31xf32>
    %181 = vector.broadcast %174 : f32 to vector<2x31xf32>
    %182 = arith.mulf %4, %181 : vector<2x31xf32>
    %183 = arith.addf %180, %182 : vector<2x31xf32>
    %184 = vector.broadcast %175 : f32 to vector<2x31xf32>
    %185 = arith.addf %183, %184 : vector<2x31xf32>
    %186 = vector.broadcast %172 : f32 to vector<2x31xf32>
    %187 = arith.mulf %3, %186 : vector<2x31xf32>
    %188 = vector.broadcast %173 : f32 to vector<2x31xf32>
    %189 = arith.mulf %4, %188 : vector<2x31xf32>
    %190 = arith.addf %187, %189 : vector<2x31xf32>
    %191 = vector.broadcast %174 : f32 to vector<2x31xf32>
    %192 = arith.mulf %5, %191 : vector<2x31xf32>
    %193 = arith.addf %190, %192 : vector<2x31xf32>
    %194 = vector.broadcast %175 : f32 to vector<2x31xf32>
    %195 = arith.addf %193, %194 : vector<2x31xf32>
    %196 = arith.maximumf %185, %195 : vector<2x31xf32>
    %cst_37 = arith.constant 0.000000e+00 : f32
    %197 = vector.broadcast %cst_37 : f32 to vector<2x31xf32>
    %198 = arith.maximumf %196, %197 : vector<2x31xf32>
    %cst_38 = arith.constant dense<0.000000e+00> : vector<2xf32>
    %199 = vector.multi_reduction <add>, %198, %cst_38 [1] : vector<2x31xf32> to vector<2xf32>
    %200 = vector.shape_cast %199 : vector<2xf32> to vector<2x1xf32>
    %201 = vector.extract_strided_slice %198 {offsets = [0, 0], sizes = [2, 1], strides = [1, 1]} : vector<2x31xf32> to vector<2x1xf32>
    %202 = vector.extract_strided_slice %198 {offsets = [0, 1], sizes = [2, 1], strides = [1, 1]} : vector<2x31xf32> to vector<2x1xf32>
    %203 = vector.extract_strided_slice %198 {offsets = [0, 29], sizes = [2, 1], strides = [1, 1]} : vector<2x31xf32> to vector<2x1xf32>
    %204 = vector.extract_strided_slice %198 {offsets = [0, 30], sizes = [2, 1], strides = [1, 1]} : vector<2x31xf32> to vector<2x1xf32>
    %205 = arith.subf %200, %203 : vector<2x1xf32>
    %206 = arith.subf %205, %204 : vector<2x1xf32>
    %207 = arith.subf %200, %201 : vector<2x1xf32>
    %208 = arith.subf %207, %204 : vector<2x1xf32>
    %209 = arith.subf %200, %201 : vector<2x1xf32>
    %210 = arith.subf %209, %202 : vector<2x1xf32>
    %211 = vector.extract_strided_slice %6 {offsets = [9, 0], sizes = [1, 64], strides = [1, 1]} : vector<12x64xf32> to vector<1x64xf32>
    %212 = vector.broadcast %206 : vector<2x1xf32> to vector<2x64xf32>
    %213 = vector.broadcast %211 : vector<1x64xf32> to vector<2x64xf32>
    %214 = arith.mulf %212, %213 : vector<2x64xf32>
    %215 = arith.addf %171, %214 : vector<2x64xf32>
    %216 = vector.extract_strided_slice %6 {offsets = [10, 0], sizes = [1, 64], strides = [1, 1]} : vector<12x64xf32> to vector<1x64xf32>
    %217 = vector.broadcast %208 : vector<2x1xf32> to vector<2x64xf32>
    %218 = vector.broadcast %216 : vector<1x64xf32> to vector<2x64xf32>
    %219 = arith.mulf %217, %218 : vector<2x64xf32>
    %220 = arith.addf %215, %219 : vector<2x64xf32>
    %221 = vector.extract_strided_slice %6 {offsets = [11, 0], sizes = [1, 64], strides = [1, 1]} : vector<12x64xf32> to vector<1x64xf32>
    %222 = vector.broadcast %210 : vector<2x1xf32> to vector<2x64xf32>
    %223 = vector.broadcast %221 : vector<1x64xf32> to vector<2x64xf32>
    %224 = arith.mulf %222, %223 : vector<2x64xf32>
    %225 = arith.addf %220, %224 : vector<2x64xf32>
    %cst_39 = arith.constant 0.000000e+00 : f32
    %226 = vector.broadcast %cst_39 : f32 to vector<2x64xf32>
    %227 = arith.maximumf %225, %226 : vector<2x64xf32>
    %c0_40 = arith.constant 0 : index
    %c0_41 = arith.constant 0 : index
    %228 = vector.load %arg7[%c0_40, %c0_41] : memref<64x2xf32, #tpu.memory_space<vmem>>, vector<64x2xf32>
    %cst_42 = arith.constant dense<0.000000e+00> : vector<2x2xf32>
    %229 = tpu.matmul %227, %228, %cst_42 {dimension_numbers = #tpu.dot_dimension_numbers<[1], [0], [0], [1], [0, 0, 1, 1], [], []>} : vector<2x64xf32>, vector<64x2xf32>, vector<2x2xf32> -> vector<2x2xf32>
    %c0_43 = arith.constant 0 : index
    %c0_44 = arith.constant 0 : index
    %230 = vector.load %arg8[%c0_43, %c0_44] : memref<1x2xf32, #tpu.memory_space<vmem>>, vector<1x2xf32>
    %231 = vector.broadcast %230 : vector<1x2xf32> to vector<2x2xf32>
    %232 = arith.addf %229, %231 : vector<2x2xf32>
    %c0_45 = arith.constant 0 : index
    %c0_46 = arith.constant 0 : index
    %233 = vector.load %arg9[%c0_45, %c0_46] : memref<2x2xf32, #tpu.memory_space<vmem>>, vector<2x2xf32>
    tpu.vector_store %arg9[%c0_45, %c0_46], %232 {strides = array<i32>} : memref<2x2xf32, #tpu.memory_space<vmem>>, vector<2x2xf32>,
    return
  }
  func.func @transform_0(%arg0: i32) -> (i32, i32) {
    %c0_i32 = arith.constant 0 : i32
    %c0_i32_0 = arith.constant 0 : i32
    return %arg0, %c0_i32 : i32, i32
  }
  func.func @transform_1(%arg0: i32) -> (i32, i32) {
    %c0_i32 = arith.constant 0 : i32
    %c0_i32_0 = arith.constant 0 : i32
    return %arg0, %c0_i32 : i32, i32
  }
  func.func @transform_2(%arg0: i32) -> (i32, i32) {
    %c0_i32 = arith.constant 0 : i32
    %c0_i32_0 = arith.constant 0 : i32
    %c0_i32_1 = arith.constant 0 : i32
    return %c0_i32, %c0_i32_0 : i32, i32
  }
  func.func @transform_3(%arg0: i32) -> i32 {
    %c0_i32 = arith.constant 0 : i32
    %c0_i32_0 = arith.constant 0 : i32
    return %c0_i32 : i32
  }
  func.func @transform_4(%arg0: i32) -> (i32, i32) {
    %c0_i32 = arith.constant 0 : i32
    %c0_i32_0 = arith.constant 0 : i32
    %c0_i32_1 = arith.constant 0 : i32
    return %c0_i32, %c0_i32_0 : i32, i32
  }
  func.func @transform_5(%arg0: i32) -> (i32, i32) {
    %c0_i32 = arith.constant 0 : i32
    %c0_i32_0 = arith.constant 0 : i32
    %c0_i32_1 = arith.constant 0 : i32
    return %c0_i32, %c0_i32_0 : i32, i32
  }
  func.func @transform_6(%arg0: i32) -> (i32, i32) {
    %c0_i32 = arith.constant 0 : i32
    %c0_i32_0 = arith.constant 0 : i32
    %c0_i32_1 = arith.constant 0 : i32
    return %c0_i32, %c0_i32_0 : i32, i32
  }
  func.func @transform_7(%arg0: i32) -> (i32, i32) {
    %c0_i32 = arith.constant 0 : i32
    %c0_i32_0 = arith.constant 0 : i32
    %c0_i32_1 = arith.constant 0 : i32
    return %c0_i32, %c0_i32_0 : i32, i32
  }
  func.func @transform_8(%arg0: i32) -> (i32, i32) {
    %c0_i32 = arith.constant 0 : i32
    %c0_i32_0 = arith.constant 0 : i32
    return %arg0, %c0_i32 : i32, i32
  }
}

</mosaic_0001>

<bundles_post_ra>
// kernel: tpu_custom_call.1
= control target key start
LH: loop header
LB: loop body
LE: loop exit
PB: predicated region body
PF: predicated region fallthrough
CT: control target
= control target key end

     0   :  { %13 = vsyncpa [#allocation4], 0  ;;  %s662_s0 = inlined_call_operand.vmem [shape: f32[2,32], index: 0, kind: input, shape index: {}]   ;;  %s663_s1 = inlined_call_operand.vmem [shape: f32[2,32], index: 1, kind: input, shape index: {}]   ;;  %s664_s2 = inlined_call_operand.vmem [shape: f32[4,3], index: 2, kind: input, shape index: {}]   ;;  %s665_s3 = inlined_call_operand.vmem [shape: f32[4], index: 3, kind: input, shape index: {}]   ;;  %s666_s4 = inlined_call_operand.vmem [shape: f32[12,64], index: 4, kind: input, shape index: {}]   ;;  %s667_s5 = inlined_call_operand.vmem [shape: f32[1,64], index: 5, kind: input, shape index: {}]   ;;  %s668_s6 = inlined_call_operand.vmem [shape: f32[64,2], index: 6, kind: input, shape index: {}]   ;;  %s669_s7 = inlined_call_operand.vmem [shape: f32[1,2], index: 7, kind: input, shape index: {}]   ;;  %s670_s8 = inlined_call_operand.hbm [shape: f32[2,2], index: 8, kind: output, shape index: {}]  }
   0x1   :  { %14 = vsyncpa [#allocation6], 0 }
   0x2   :  { %15 = vsyncpa [#allocation3], 0  ;;  %s25_s29 = sshll.u32 %s664_s2, 4  ;;  %s34_s10 = sshll.u32 %s665_s3, 4  ;;  %s26_s29 = int_to_ptr.vmem [resolvable:$true] %s25_s29  ;;  %s35_s10 = int_to_ptr.vmem [resolvable:$true] %s34_s10 }
   0x3   :  { %s487_s11 = smov [#allocation2]   ;;  %s488_s12 = smov [#allocation5]  }
   0x4   :  { %28 = dma.vmem_to_smem %s26_s29, 64, %s487_s11, [#allocation4]  }
   0x5   :  { %37 = dma.vmem_to_smem %s35_s10, 16, %s488_s12, [#allocation6]  }
   0x6   :  { %481 = dma.done.wait [#allocation4], 64  }
   0x7   :  { %482 = vsyncadd [#allocation4], 4294967232 }
   0x8   :  { %483 = dma.done.wait [#allocation6], 16  }
   0x9   :  { %484 = vsyncadd [#allocation6], 4294967280 }
   0xa   :  { %54 = sfence }
   0xb   :  { %s402_s13 = sld [smem:[#allocation2 + $0x2]]  ;;  %v552_v0 = vld [vmem:[%s663_s1] sm:$0x3]  ;;  %s489_s19 = smov 127   ;;  %vm97_vm0 = vcmask 246784   ;;  %vm357_vm1 = vcmask 523264  }
   0xc   :  { %s545_s14 = sld [smem:[#allocation2 + $0x1]]  ;;  %v557_v1 = vld [vmem:[%s662_s0] sm:$0x3]  ;;  %s490_s30 = smov 98   ;;  %vm381_vm2 = vcmask 9216  }
   0xd   :  { %s547_s2 = sld [smem:[#allocation2 + $0x81]] }
   0xe   :  { %s405_s18 = sld [smem:[#allocation2 + $0x82]] }
   0xf   :  { %s409_s1 = sld [smem:[#allocation2 + $0x102]] }
  0x10   :  { %s565_s20 = sld [smem:[#allocation2 + $0x101]] }
  0x11   :  { %v72_v2 = vstv %s402_s13  ;;  %s413_s0 = sld [smem:[#allocation2 + $0x182]] }
  0x12   :  { %v88_v3 = vmul.f32 %v72_v2, %v552_v0  ;;  %v69_v4 = vstv %s545_s14  ;;  %v73_v9 = vmul.f32 %v72_v2, %v557_v1  ;;  %s574_s21 = sld [smem:[#allocation2 + $0x181]] }
  0x13   :  { %v82_v5 = vmul.f32 %v69_v4, %v557_v1  ;;  %v140_v6 = vstv %s547_s2  ;;  %s63_s22 = sld [smem:[#allocation2]]  ;;  %v70_v27 = vmul.f32 %v69_v4, %v552_v0 }
  0x14   :  { %90 = vrot.lane.b32.xlu1 %v88_v3, %s489_s19  ;;  %v153_v7 = vmul.f32 %v140_v6, %v557_v1  ;;  %v143_v8 = vstv %s405_s18  ;;  %s403_s23 = sld [smem:[#allocation2 + $0x80]]  ;;  %v141_v33 = vmul.f32 %v140_v6, %v552_v0 }
  0x15   :  { %84 = vrot.lane.b32.xlu0 %v82_v5, %s489_s19  ;;  %v144_v10 = vmul.f32 %v143_v8, %v557_v1  ;;  %v213_v11 = vstv %s409_s1  ;;  %v159_v13 = vmul.f32 %v143_v8, %v552_v0  ;;  %s591_s24 = sld [smem:[#allocation2 + $0x100]] }
  0x16   :  { %v210_v12 = vstv %s565_s20  ;;  %v214_v14 = vmul.f32 %v213_v11, %v557_v1  ;;  %v229_v18 = vmul.f32 %v213_v11, %v552_v0  ;;  %s66_s25 = sld [smem:[#allocation5]] }
  0x17   :  { %146 = vrot.lane.b32.xlu2 %v144_v10, %s489_s19  ;;  %v223_v15 = vmul.f32 %v210_v12, %v557_v1  ;;  %v283_v16 = vstv %s413_s0  ;;  %s600_s26 = sld [smem:[#allocation2 + $0x180]]  ;;  %v211_v43 = vmul.f32 %v210_v12, %v552_v0 }
  0x18   :  { %v280_v17 = vstv %s574_s21  ;;  %v284_v19 = vmul.f32 %v283_v16, %v557_v1  ;;  %v299_v21 = vmul.f32 %v283_v16, %v552_v0  ;;  %s602_s27 = sld [smem:[#allocation5 + $0x1]] }
  0x19   :  { %v293_v20 = vmul.f32 %v280_v17, %v557_v1  ;;  %v67_v23 = vstv %s63_s22  ;;  %s604_s28 = sld [smem:[#allocation5 + $0x2]]  ;;  %v281_v63 = vmul.f32 %v280_v17, %v552_v0 }
  0x1a   :  { %v81_v25 = vmul.f32 %v67_v23, %v552_v0  ;;  %v68_v28 = vmul.f32 %v67_v23, %v557_v1  ;;  %v138_v29 = vstv %s403_s23  ;;  %s414_s29 = sld [smem:[#allocation5 + $0x3]] }
  0x1b   :  { %v152_v31 = vmul.f32 %v138_v29, %v552_v0  ;;  %v139_v34 = vmul.f32 %v138_v29, %v557_v1  ;;  %v208_v36 = vstv %s591_s24 }
  0x1c   :  { %155 = vrot.lane.b32.xlu1 %v153_v7, %s489_s19  ;;  %v71_v35 = vadd.f32 %v70_v27, %v68_v28  ;;  %v79_v40 = vstv %s66_s25  ;;  %v209_v42 = vmul.f32 %v208_v36, %v557_v1  ;;  %v222_v52 = vmul.f32 %v208_v36, %v552_v0 }
  0x1d   :  { %75 = vrot.lane.b32.xlu0 %v73_v9, %s489_s19  ;;  %v142_v44 = vadd.f32 %v141_v33, %v139_v34  ;;  %v278_v53 = vstv %s600_s26  ;;  %v492_v27 = vmov 29   ;;  %s493_s26 = smov [#allocation7]  }
  0x1e   :  { %v212_v49 = vadd.f32 %v211_v43, %v209_v42  ;;  %v150_v54 = vstv %s602_s27  ;;  %v279_v62 = vmul.f32 %v278_v53, %v557_v1  ;;  %v292_v10 = vmul.f32 %v278_v53, %v552_v0  ;;  %423 = vset.pattern.permute.xlu1 %v492_v27  ;;  %s388_s27 = sshll.u32 %s493_s26, 4  ;;  %s389_s27 = int_to_ptr.vmem [resolvable:$true] %s388_s27 }
  0x1f   :  { %161 = vrot.lane.b32.xlu2 %v159_v13, %s489_s19  ;;  %v220_v60 = vstv %s604_s28 }
  0x20   :  { %v282_v8 = vadd.f32 %v281_v63, %v279_v62  ;;  %v431_v63 = vld [vmem:[%s667_s5] ss:$0 sm:$0xff] }
  0x24   :  { %216 = vrot.lane.b32.xlu1 %v214_v14, %s489_s19  ;;  %v290_v14 = vstv %s414_s29 }
  0x25   :  { %225 = vrot.lane.b32.xlu0 %v223_v15, %s489_s19 }
  0x27   :  { %231 = vrot.lane.b32.xlu2 %v229_v18, %s489_s19 }
  0x2c   :  { %286 = vrot.lane.b32.xlu1 %v284_v19, %s489_s19 }
  0x2d   :  { %295 = vrot.lane.b32.xlu0 %v293_v20, %s489_s19 }
  0x2f   :  { %301 = vrot.lane.b32.xlu2 %v299_v21, %s489_s19 }
  0x71   :  { %v147_v22 = vpop.permute.xlu2 %146 }
  0x72   :  { %v149_v50 = vadd.f32 %v147_v22, %v142_v44 }
  0x74   :  { %v151_v2 = vadd.f32 %v150_v54, %v149_v50 }
  0x79   :  { %v162_v32 = vpop.permute.xlu2 %161 }
  0x81   :  { %v232_v55 = vpop.permute.xlu2 %231 }
  0x86   :  { %v91_v24 = vpop.permute.xlu1 %90 }
  0x87   :  { %v85_v26 = vpop.permute.xlu0 %84 }
  0x88   :  { %v87_v30 = vadd.f32 %v85_v26, %v81_v25  ;;  %v491_v26 = vmov 0  }
  0x89   :  { %v302_v16 = vpop.permute.xlu2 %301  ;;  %424 = vset.pattern.permute.xlu2 %v491_v26  ;;  %427 = vset.pattern.permute.xlu0 %v491_v26 }
  0x8a   :  { %v93_v37 = vadd.f32 %v91_v24, %v87_v30 }
  0x8c   :  { %v94_v46 = vadd.f32 %v93_v37, %v79_v40 }
  0x8e   :  { %v156_v38 = vpop.permute.xlu1 %155 }
  0x8f   :  { %v158_v39 = vadd.f32 %v156_v38, %v152_v31  ;;  %v76_v41 = vpop.permute.xlu0 %75 }
  0x90   :  { %v78_v45 = vadd.f32 %v76_v41, %v71_v35 }
  0x91   :  { %v164_v48 = vadd.f32 %v162_v32, %v158_v39 }
  0x92   :  { %v80_v47 = vadd.f32 %v79_v40, %v78_v45 }
  0x93   :  { %v165_v57 = vadd.f32 %v164_v48, %v150_v54  ;;  %v352_v54 = vld [vmem:[%s668_s6 + $0x38] sm:$0xff] }
  0x94   :  { %v95_v51 = vmax.f32 %v80_v47, %v94_v46  ;;  %369 = vmatpush.msra.mxu0 %v352_v54 }
  0x95   :  { %v166_v5 = vmax.f32 %v151_v2, %v165_v57  ;;  %v350_v57 = vld [vmem:[%s668_s6 + $0x28] sm:$0xff] }
  0x96   :  { %v96_v56 = vmax.f32 %v95_v51, 0.0  ;;  %v217_v58 = vpop.permute.xlu1 %216 }
  0x97   :  { %v226_v59 = vpop.permute.xlu0 %225  ;;  %v219_v61 = vadd.f32 %v217_v58, %v212_v49  ;;  %v167_v11 = vmax.f32 %v166_v5, 0.0  ;;  %v347_v5 = vld [vmem:[%s668_s6 + $0x10] sm:$0xff] }
  0x98   :  { %v228_v3 = vadd.f32 %v226_v59, %v222_v52  ;;  %107 = vrot.lane.b32.xlu2 %v96_v56, %s490_s30  ;;  %103 = vrot.lane.b32.xlu1 %v96_v56, %s489_s19  ;;  %v98_v4 = vsel %vm97_vm0, %v96_v56, 0.0  ;;  %v349_v59 = vld [vmem:[%s668_s6 + $0x20] sm:$0xff] }
  0x99   :  { %99 = vadd.xlane.f32.xlu0 %v98_v4  ;;  %v221_v6 = vadd.f32 %v220_v60, %v219_v61  ;;  %v168_v0 = vsel %vm97_vm0, %v167_v11, 0.0 }
  0x9a   :  { %v234_v7 = vadd.f32 %v232_v55, %v228_v3  ;;  %v351_v55 = vld [vmem:[%s668_s6 + $0x30] sm:$0xff] }
  0x9b   :  { %370 = vmatpush.msra.mxu0 %v351_v55 }
  0x9c   :  { %v235_v9 = vadd.f32 %v234_v7, %v220_v60  ;;  %v348_v60 = vld [vmem:[%s668_s6 + $0x18] sm:$0xff] }
  0x9d   :  { %371 = vmatpush.msra.mxu0 %v350_v57 }
  0x9e   :  { %v236_v1 = vmax.f32 %v221_v6, %v235_v9  ;;  %v287_v12 = vpop.permute.xlu1 %286 }
  0x9f   :  { %v296_v13 = vpop.permute.xlu0 %295  ;;  %v289_v15 = vadd.f32 %v287_v12, %v282_v8  ;;  %372 = vmatpush.msra.mxu0 %v349_v59  ;;  %v346_v8 = vld [vmem:[%s668_s6 + $0x8] sm:$0xff] }
  0xa0   :  { %v237_v17 = vmax.f32 %v236_v1, 0.0  ;;  %v298_v18 = vadd.f32 %v296_v13, %v292_v10  ;;  %173 = vrot.lane.b32.xlu2 %v167_v11, %s489_s19  ;;  %v345_v1 = vld [vmem:[%s668_s6] sm:$0xff] }
  0xa1   :  { %v291_v19 = vadd.f32 %v290_v14, %v289_v15  ;;  %373 = vmatpush.msra.mxu0 %v348_v60 }
  0xa2   :  { %v304_v20 = vadd.f32 %v302_v16, %v298_v18  ;;  %247 = vrot.lane.b32.xlu1 %v237_v17, %s490_s30  ;;  %v238_v25 = vsel %vm97_vm0, %v237_v17, 0.0 }
  0xa3   :  { %374 = vmatpush.msra.mxu0 %v347_v5 }
  0xa4   :  { %v305_v21 = vadd.f32 %v304_v20, %v290_v14 }
  0xa5   :  { %375 = vmatpush.msra.mxu0 %v346_v8 }
  0xa6   :  { %v306_v22 = vmax.f32 %v291_v19, %v305_v21 }
  0xa7   :  { %376 = vmatpush.msra.mxu0 %v345_v1 }
  0xa8   :  { %v307_v23 = vmax.f32 %v306_v22, 0.0  ;;  %177 = vrot.lane.b32.xlu2 %v167_v11, %s490_s30 }
  0xaa   :  { %317 = vrot.lane.b32.xlu1 %v307_v23, %s490_s30  ;;  %v308_v24 = vsel %vm97_vm0, %v307_v23, 0.0  ;;  %s390_s30 = sshll.u32 %s670_s8, 4  ;;  %s391_s30 = int_to_ptr.hbm [resolvable:$true] %s390_s30 }
  0xad   :  { %243 = vrot.lane.b32.xlu0 %v237_v17, %s489_s19 }
  0xb0   :  { %313 = vrot.lane.b32.xlu2 %v307_v23, %s489_s19 }
  0xd4   :  { %169 = vadd.xlane.f32.xlu1 %v168_v0 }
  0xd7   :  { %309 = vadd.xlane.f32.xlu0 %v308_v24 }
  0xd9   :  { %239 = vadd.xlane.f32.xlu2 %v238_v25 }
  0xf2   :  { %v108_v30 = vpop.permute.xlu2 %107 }
  0xfa   :  { %v174_v34 = vpop.permute.xlu2 %173 }
 0x102   :  { %v178_v36 = vpop.permute.xlu2 %177 }
 0x10a   :  { %v104_v31 = vpop.permute.xlu1 %103  ;;  %v314_v38 = vpop.permute.xlu2 %313 }
 0x10c   :  { %v100_v28 = vpop.xlane.xlu0 %99 }
 0x10d   :  { %v101_v29 = vsub.f32 %v100_v28, %v96_v56  ;;  %v57_v56 = vld [vmem:[%s666_s4] sm:$0xff] }
 0x10e   :  { %v116_v58 = vperm.slane %v57_v56, 0  ;;  %v124_v3 = vperm.slane %v57_v56, 1  ;;  %v131_v4 = vperm.slane %v57_v56, 2  ;;  %v186_v7 = vperm.slane %v57_v56, 3 }
 0x10f   :  { %v106_v32 = vsub.f32 %v101_v29, %v104_v31  ;;  %v110_v33 = vsub.f32 %v101_v29, %v108_v30  ;;  %v201_v19 = vperm.slane %v57_v56, 5  ;;  %v264_v24 = vperm.slane %v57_v56, 7 }
 0x111   :  { %121 = vperm.xlu2 %424, %v110_v33   ;;  %113 = vperm.xlu1 %423, %v106_v32  }
 0x114   :  { %v248_v35 = vpop.permute.xlu1 %247 }
 0x119   :  { %425 = vset.pattern.permute.xlu1 %v491_v26  ;;  %426 = vset.pattern.permute.xlu2 %v492_v27 }
 0x11a   :  { %128 = vperm.xlu1 %425, %v106_v32  }
 0x11c   :  { %v318_v37 = vpop.permute.xlu1 %317 }
 0x11f   :  { %v244_v44 = vpop.permute.xlu0 %243 }
 0x147   :  { %v170_v39 = vpop.xlane.xlu1 %169 }
 0x148   :  { %v171_v40 = vsub.f32 %v170_v39, %v167_v11  ;;  %v194_v11 = vperm.slane %v57_v56, 4 }
 0x14a   :  { %v176_v41 = vsub.f32 %v171_v40, %v174_v34  ;;  %v180_v42 = vsub.f32 %v171_v40, %v178_v36  ;;  %v310_v48 = vpop.xlane.xlu0 %309 }
 0x14b   :  { %v311_v49 = vsub.f32 %v310_v48, %v307_v23  ;;  %v256_v23 = vperm.slane %v57_v56, 6  ;;  %v432_v48 = vld [vmem:[%s669_s7] ss:$0 sm:$0xff] }
 0x14c   :  { %v240_v43 = vpop.xlane.xlu2 %239  ;;  %198 = vperm.xlu0 %427, %v176_v41   ;;  %183 = vperm.xlu2 %426, %v176_v41  }
 0x14d   :  { %191 = vperm.xlu1 %425, %v180_v42   ;;  %v241_v45 = vsub.f32 %v240_v43, %v237_v17  ;;  %v316_v50 = vsub.f32 %v311_v49, %v314_v38  ;;  %v320_v51 = vsub.f32 %v311_v49, %v318_v37 }
 0x14f   :  { %v246_v46 = vsub.f32 %v241_v45, %v244_v44  ;;  %v250_v47 = vsub.f32 %v241_v45, %v248_v35 }
 0x154   :  { %253 = vperm.xlu2 %426, %v246_v46  }
 0x155   :  { %261 = vperm.xlu1 %425, %v250_v47  }
 0x15c   :  { %428 = vset.pattern.permute.xlu2 %v491_v26 }
 0x15d   :  { %429 = vset.pattern.permute.xlu1 %v492_v27  ;;  %268 = vperm.xlu2 %428, %v246_v46  }
 0x15e   :  { %323 = vperm.xlu1 %429, %v316_v50  }
 0x165   :  { %331 = vperm.xlu2 %428, %v320_v51  }
 0x166   :  { %430 = vset.pattern.permute.xlu1 %v491_v26  ;;  %v58_v26 = vld [vmem:[%s666_s4 + $0x8] sm:$0xf] }
 0x167   :  { %338 = vperm.xlu1 %430, %v316_v50   ;;  %v271_v30 = vperm.slane %v58_v26, 0  ;;  %v326_v32 = vperm.slane %v58_v26, 1  ;;  %v334_v37 = vperm.slane %v58_v26, 2  ;;  %v341_v41 = vperm.slane %v58_v26, 3 }
 0x16b   :  { %v122_v53 = vpop.permute.xlu2 %121 }
 0x16c   :  { %v125_v9 = vmul.f32 %v124_v3, %v122_v53 }
 0x183   :  { %v114_v52 = vpop.permute.xlu1 %113 }
 0x184   :  { %v117_v2 = vmul.f32 %v116_v58, %v114_v52 }
 0x186   :  { %v118_v6 = vadd.f32 %v431_v63, %v117_v2 }
 0x188   :  { %v126_v13 = vadd.f32 %v125_v9, %v118_v6 }
 0x18c   :  { %v129_v61 = vpop.permute.xlu1 %128 }
 0x18d   :  { %v132_v10 = vmul.f32 %v131_v4, %v129_v61 }
 0x18f   :  { %v133_v16 = vadd.f32 %v132_v10, %v126_v13 }
 0x1a6   :  { %v184_v62 = vpop.permute.xlu2 %183 }
 0x1a7   :  { %v187_v14 = vmul.f32 %v186_v7, %v184_v62 }
 0x1a9   :  { %v188_v18 = vadd.f32 %v187_v14, %v133_v16 }
 0x1ae   :  { %v254_v15 = vpop.permute.xlu2 %253 }
 0x1af   :  { %v257_v28 = vmul.f32 %v256_v23, %v254_v15 }
 0x1b7   :  { %v269_v27 = vpop.permute.xlu2 %268 }
 0x1b8   :  { %v272_v35 = vmul.f32 %v271_v30, %v269_v27 }
 0x1be   :  { %v199_v20 = vpop.permute.xlu0 %198 }
 0x1bf   :  { %v192_v12 = vpop.permute.xlu1 %191  ;;  %v202_v0 = vmul.f32 %v201_v19, %v199_v20  ;;  %v332_v39 = vpop.permute.xlu2 %331 }
 0x1c0   :  { %v195_v17 = vmul.f32 %v194_v11, %v192_v12  ;;  %v335_v42 = vmul.f32 %v334_v37, %v332_v39 }
 0x1c2   :  { %v196_v21 = vadd.f32 %v195_v17, %v188_v18 }
 0x1c4   :  { %v203_v25 = vadd.f32 %v202_v0, %v196_v21 }
 0x1c6   :  { %v258_v31 = vadd.f32 %v257_v28, %v203_v25 }
 0x1c7   :  { %v262_v22 = vpop.permute.xlu1 %261 }
 0x1c8   :  { %v265_v29 = vmul.f32 %v264_v24, %v262_v22 }
 0x1ca   :  { %v266_v33 = vadd.f32 %v265_v29, %v258_v31 }
 0x1cc   :  { %v273_v38 = vadd.f32 %v272_v35, %v266_v33 }
 0x1d0   :  { %v324_v34 = vpop.permute.xlu1 %323 }
 0x1d1   :  { %v327_v36 = vmul.f32 %v326_v32, %v324_v34 }
 0x1d3   :  { %v328_v40 = vadd.f32 %v327_v36, %v273_v38 }
 0x1d5   :  { %v336_v44 = vadd.f32 %v335_v42, %v328_v40 }
 0x1d9   :  { %v339_v43 = vpop.permute.xlu1 %338 }
 0x1da   :  { %v342_v45 = vmul.f32 %v341_v41, %v339_v43 }
 0x1dc   :  { %v343_v46 = vadd.f32 %v342_v45, %v336_v44 }
 0x1de   :  { %v344_v47 = vmax.f32 %v343_v46, 0.0 }
 0x1e0   :  { %415 = vmatmul.msk.f32.vlgmr.msra.gmra.mxu0 %vm357_vm1, %v344_v47 }
 0x25d   :  { %v378_v49 = vpop.f32.mrf.mxu0 }
 0x25e   :  { %v379_v50 = vadd.f32 %v432_v48, %v378_v49 }
 0x260   :  { %382 = vst.msk [vmem:[#allocation7] sm:$0x3] %vm381_vm2, %v379_v50 }
 0x261   :  { %393 = dma.vmem_to_hbm [thread:$0]  %s389_s27, 32, %s391_s30, [#allocation3]  }
 0x262   :  { %485 = dma.done.wait [#allocation3], 32  }
 0x263   :  { %486 = vsyncadd [#allocation3], 4294967264 }
 0x264   :  { %398 = vsyncpa [#allocation3], 1 }
 0x265   :  { %399 = vsyncpa [#allocation4], 1 }
 0x266   :  { %400 = vsyncpa [#allocation6], 1 }

</bundles_post_ra>
